<compile_context>
chip_gen: v7x
topology: tpu7x:2x2x1
jax: 0.10.0
libtpu: 0.0.40
codegen_flags: <defaults>
</compile_context>

<pallas_src>
import functools

import jax
import jax.numpy as jnp
import numpy as np
from jax.experimental import pallas as pl
from jax.experimental.pallas import tpu as pltpu

INPUT_FEATURES = 50
PADDED_FEATURES = 64          # 50 -> 64 for aligned contraction dim
NUM_CLASSES = 10
OUT_WIDTH = 128               # lane-dense fused output block
CONF_LANE = NUM_CLASSES       # confidence lives in lane 10
HEAD_HIDDEN = 128             # 64 (classifier) + 16 (confidence) padded to 128

# rows of the packed bias/cos slab (each row is 256 lanes, zero-padded, f32)
BC_FE_B0, BC_FE_B1, BC_FE_B2 = 0, 1, 2
BC_Q1_RB = 3                  # rows 3, 4, 5
BC_Q1_EB = 6
BC_COS1 = 7
BC_Q2_RB = 8                  # rows 8, 9
BC_Q2_EB = 10
BC_COS2 = 11
BC_H1_B = 12
BC_H2_B = 13
BC_ROWS = 16                  # padded to a sublane multiple of 8
BC_LANES = 256


# ------------------------------- the kernel --------------------------------
def qitc_kernel(
    x_ref,                                   # (tile_b, 64) bf16
    fe_w0, fe_w1, fe_w2,                     # feature extractor weights (bf16)
    q1_rw, q1_ew,                            # quantum layer 1: (3,128,128), (128,64)
    q2_rw, q2_ew,                            # quantum layer 2: (2,64,64),  (64,32)
    h1_w, h2_w,                              # fused heads: (32,128), (128,128)
    bc_ref,                                  # (16, 256) f32: biases + cos(phase)
    out_ref,                                 # (tile_b, 128) f32
    *, act_dtype,
):
    def bias(row, n):
        # static ref view -> (1, n) f32, zero-cost slice, broadcasts over batch
        return bc_ref[row:row + 1, :n]

    def linear(a, w_ref, row, n):
        # bf16 MXU operands, f32 accumulation, f32 bias add
        return (jnp.dot(a.astype(jnp.bfloat16), w_ref[...],
                        preferred_element_type=jnp.float32) + bias(row, n))

    def linear_k(a, w_ref, k, row, n):
        return (jnp.dot(a.astype(jnp.bfloat16), w_ref[k],
                        preferred_element_type=jnp.float32) + bias(row, n))

    def softmax(z):                          # f32 in, act_dtype out
        m = jnp.max(z, axis=-1, keepdims=True)
        e = jnp.exp(z - m)
        return (e * pl.reciprocal(jnp.sum(e, axis=-1, keepdims=True),
                                  approx=True)).astype(act_dtype)

    def act(v):
        return v.astype(act_dtype)

    x = x_ref[...]                           # already bf16 (streamed from HBM)

    # --- feature extractor (dropout = identity in eval) ---
    h = jnp.maximum(act(linear(x, fe_w0, BC_FE_B0, 128)), 0.0)
    h = jnp.maximum(act(linear(h, fe_w1, BC_FE_B1, 256)), 0.0)
    h = act(linear(h, fe_w2, BC_FE_B2, 128))

    # --- quantum layer 1: 3 rotation gates (128->128), *cos(phase), entangle -> softmax ---
    cos1 = act(bc_ref[BC_COS1:BC_COS1 + 1, :128])
    q = h
    for k in range(3):
        q = jnp.tanh(act(linear_k(q, q1_rw, k, BC_Q1_RB + k, 128))) * cos1
    q = softmax(linear(q, q1_ew, BC_Q1_EB, 64))          # (B, 64)

    # --- quantum layer 2: 2 rotation gates (64->64), *cos(phase), entangle -> softmax ---
    cos2 = act(bc_ref[BC_COS2:BC_COS2 + 1, :64])
    r = q
    for k in range(2):
        r = jnp.tanh(act(linear_k(r, q2_rw, k, BC_Q2_RB + k, 64))) * cos2
    r = softmax(linear(r, q2_ew, BC_Q2_EB, 32))           # (B, 32)

    # --- fused classifier + confidence heads ---
    hh = jnp.maximum(act(linear(r, h1_w, BC_H1_B, 128)), 0.0)   # [:, :64] cls, [:, 64:80] conf
    head = linear(hh, h2_w, BC_H2_B, 128)    # f32: lanes 0..9 logits, lane 10 conf-logit
    sig = 0.5 * (1.0 + jnp.tanh(0.5 * head))               # one-EUP sigmoid, exact [0, 1]
    lane = jax.lax.broadcasted_iota(jnp.int32, head.shape, 1)
    out_ref[...] = jnp.where(lane == CONF_LANE, sig, head)


# --------------------------- parameter construction ------------------------
def _init_linear(key, in_dim, out_dim):
    """PyTorch-style uniform(-1/sqrt(in), 1/sqrt(in)); W as [in, out], b as [out]."""
    kw, kb = jax.random.split(key)
    bound = 1.0 / np.sqrt(in_dim)
    w = jax.random.uniform(kw, (in_dim, out_dim), jnp.float32, -bound, bound)
    b = jax.random.uniform(kb, (out_dim,), jnp.float32, -bound, bound)
    return w, b


def build_params(seed=42):
    """Returns the 10 packed parameter arrays in kernel argument order."""
    key = jax.random.PRNGKey(seed)
    keys = iter(jax.random.split(key, 32))
    wdt = jnp.bfloat16

    # feature extractor (first layer contraction dim zero-padded 50 -> 64)
    fe_w0, fe_b0 = _init_linear(next(keys), INPUT_FEATURES, 128)
    fe_w0 = jnp.pad(fe_w0, ((0, PADDED_FEATURES - INPUT_FEATURES), (0, 0)))
    fe_w1, fe_b1 = _init_linear(next(keys), 128, 256)
    fe_w2, fe_b2 = _init_linear(next(keys), 256, 128)

    # quantum layer 1: 3 rotation gates (128->128), entanglement (128->64), cos(phase)
    q1_ws, q1_bs = [], []
    for _ in range(3):
        w, b = _init_linear(next(keys), 128, 128)
        q1_ws.append(w); q1_bs.append(b)
    q1_rw = jnp.stack(q1_ws)                               # (3, 128, 128)
    q1_ew, q1_eb = _init_linear(next(keys), 128, 64)
    cos1 = jnp.cos(jax.random.normal(next(keys), (128,), jnp.float32))

    # quantum layer 2: 2 rotation gates (64->64), entanglement (64->32), cos(phase)
    q2_ws, q2_bs = [], []
    for _ in range(2):
        w, b = _init_linear(next(keys), 64, 64)
        q2_ws.append(w); q2_bs.append(b)
    q2_rw = jnp.stack(q2_ws)                               # (2, 64, 64)
    q2_ew, q2_eb = _init_linear(next(keys), 64, 32)
    cos2 = jnp.cos(jax.random.normal(next(keys), (64,), jnp.float32))

    # classifier + confidence heads, fused and lane-padded to 128
    cl_w0, cl_b0 = _init_linear(next(keys), 32, 64)
    cl_w1, cl_b1 = _init_linear(next(keys), 64, NUM_CLASSES)
    cf_w0, cf_b0 = _init_linear(next(keys), 32, 16)
    cf_w1, cf_b1 = _init_linear(next(keys), 16, 1)

    h1_w = jnp.zeros((32, HEAD_HIDDEN), jnp.float32)
    h1_w = h1_w.at[:, :64].set(cl_w0).at[:, 64:80].set(cf_w0)
    h1_b = jnp.zeros((HEAD_HIDDEN,), jnp.float32)
    h1_b = h1_b.at[:64].set(cl_b0).at[64:80].set(cf_b0)

    h2_w = jnp.zeros((HEAD_HIDDEN, OUT_WIDTH), jnp.float32)
    h2_w = h2_w.at[:64, :NUM_CLASSES].set(cl_w1).at[64:80, CONF_LANE].set(cf_w1[:, 0])
    h2_b = jnp.zeros((OUT_WIDTH,), jnp.float32)
    h2_b = h2_b.at[:NUM_CLASSES].set(cl_b1).at[CONF_LANE].set(cf_b1[0])

    # pack all biases + cos(phase) vectors into one (16, 256) f32 slab
    rows = [fe_b0, fe_b1, fe_b2,
            q1_bs[0], q1_bs[1], q1_bs[2], q1_eb, cos1,
            q2_bs[0], q2_bs[1], q2_eb, cos2,
            h1_b, h2_b]
    bias_cos = jnp.zeros((BC_ROWS, BC_LANES), jnp.float32)
    for i, r in enumerate(rows):
        bias_cos = bias_cos.at[i, :r.shape[0]].set(r)

    return (fe_w0.astype(wdt), fe_w1.astype(wdt), fe_w2.astype(wdt),
            q1_rw.astype(wdt), q1_ew.astype(wdt),
            q2_rw.astype(wdt), q2_ew.astype(wdt),
            h1_w.astype(wdt), h2_w.astype(wdt), bias_cos)


# ------------------------------- wrapper ------------------------------------
@functools.lru_cache(maxsize=None)
def _act_dtype():
    """bf16 elementwise on v6e/v7x (bf16 VPU/EUP); f32 elementwise on v5e and older."""
    try:
        kind = jax.devices()[0].device_kind.lower()
    except Exception:
        return jnp.float32
    if any(v in kind for v in ("v2", "v3", "v4", "v5")):
        return jnp.float32
    return jnp.bfloat16


def _padded_batch_and_tile(batch):
    # bf16 input: batch tiles stay multiples of 16 (sublane packing).
    if batch <= 16:
        return 16, 16
    # bound dead-row waste: pad to a quantum of 64, not to the tile cap
    b_pad = ((batch + 63) // 64) * 64
    # cap tile at 512 and keep >= 2 grid steps so v7x can shard across both TCs
    cap = min(512, max(16, b_pad // 2))
    tile = 16
    for t in range(16, cap + 1, 16):
        if b_pad % t == 0:
            tile = t
    return b_pad, tile


def _const_spec(p):
    zeros = (0,) * p.ndim
    return pl.BlockSpec(p.shape, lambda i, _z=zeros: _z)


def _cost_estimate(b_pad, params):
    mm_dims = [
        (PADDED_FEATURES, 128), (128, 256), (256, 128),
        (128, 128), (128, 128), (128, 128), (128, 64),
        (64, 64), (64, 64), (64, 32),
        (32, HEAD_HIDDEN), (HEAD_HIDDEN, OUT_WIDTH),
    ]
    flops = 2 * b_pad * sum(i * o for i, o in mm_dims)
    # tanh (3*128 + 2*64) + softmax exps (64 + 32) + sigmoid-tanh (128) per row
    transcendentals = b_pad * (3 * 128 + 2 * 64 + 64 + 32 + OUT_WIDTH)
    param_bytes = sum(int(np.prod(p.shape)) * jnp.dtype(p.dtype).itemsize for p in params)
    bytes_accessed = b_pad * PADDED_FEATURES * 2 + b_pad * OUT_WIDTH * 4 + param_bytes
    return pl.CostEstimate(flops=flops, transcendentals=transcendentals,
                           bytes_accessed=bytes_accessed)


@jax.jit
def quantum_threat_classifier(x, *params):
    B, F = x.shape
    b_pad, tile_b = _padded_batch_and_tile(B)

    # bf16-stream the input: halve HBM traffic, pad batch to tile quantum, 50 -> 64 feats
    xp = jnp.pad(x.astype(jnp.bfloat16), ((0, b_pad - B), (0, PADDED_FEATURES - F)))

    x_spec = pl.BlockSpec((tile_b, PADDED_FEATURES), lambda i: (i, 0))
    out_spec = pl.BlockSpec((tile_b, OUT_WIDTH), lambda i: (i, 0))
    param_specs = [_const_spec(p) for p in params]

    kernel = functools.partial(qitc_kernel, act_dtype=_act_dtype())

    out = pl.pallas_call(
        kernel,
        out_shape=jax.ShapeDtypeStruct((b_pad, OUT_WIDTH), jnp.float32),
        grid=(b_pad // tile_b,),
        in_specs=[x_spec] + param_specs,
        out_specs=out_spec,
        compiler_params=pltpu.CompilerParams(
            dimension_semantics=("parallel",),
            vmem_limit_bytes=32 << 20,
        ),
        cost_estimate=_cost_estimate(b_pad, params),
    )(xp, *params)

    logits = out[:B, :NUM_CLASSES]
    confidence = out[:B, CONF_LANE:CONF_LANE + 1]
    return logits, confidence


# --------------------------------- main --------------------------------------
if __name__ == "__main__":
    B = 8
    x = jax.random.normal(jax.random.PRNGKey(0), (B, INPUT_FEATURES), jnp.float32)
    params = build_params(seed=42)

    logits, confidence = quantum_threat_classifier(x, *params)
    jax.block_until_ready((logits, confidence))

    assert logits.shape == (B, NUM_CLASSES), logits.shape
    assert confidence.shape == (B, 1), confidence.shape
    assert bool(jnp.all(jnp.isfinite(logits)))
    assert bool(jnp.all((confidence >= 0.0) & (confidence <= 1.0)))

    print("KERNEL_OK")
</pallas_src>

<mosaic_0001>
module attributes {stable_mosaic.version = 11 : i64} {
  func.func @qitc_kernel(%arg0: i32, %arg1: memref<16x64xbf16, #tpu.memory_space<vmem>>, %arg2: memref<64x128xbf16, #tpu.memory_space<vmem>>, %arg3: memref<128x256xbf16, #tpu.memory_space<vmem>>, %arg4: memref<256x128xbf16, #tpu.memory_space<vmem>>, %arg5: memref<3x128x128xbf16, #tpu.memory_space<vmem>>, %arg6: memref<128x64xbf16, #tpu.memory_space<vmem>>, %arg7: memref<2x64x64xbf16, #tpu.memory_space<vmem>>, %arg8: memref<64x32xbf16, #tpu.memory_space<vmem>>, %arg9: memref<32x128xbf16, #tpu.memory_space<vmem>>, %arg10: memref<128x128xbf16, #tpu.memory_space<vmem>>, %arg11: memref<16x256xf32, #tpu.memory_space<vmem>>, %arg12: memref<16x128xf32, #tpu.memory_space<vmem>>) attributes {dimension_semantics = [#tpu.dimension_semantics<parallel>], iteration_bounds = array<i64: 1>, scalar_prefetch = 0 : i64, scratch_operands = 0 : i64, tpu.core_type = #tpu.core_type<tc>, window_params = [{transform_indices = @transform_0, window_bounds = array<i64: 16, 64>}, {pipeline_mode = #tpu.pipeline_mode<synchronous>, transform_indices = @transform_1, window_bounds = array<i64: 64, 128>}, {pipeline_mode = #tpu.pipeline_mode<synchronous>, transform_indices = @transform_2, window_bounds = array<i64: 128, 256>}, {pipeline_mode = #tpu.pipeline_mode<synchronous>, transform_indices = @transform_3, window_bounds = array<i64: 256, 128>}, {pipeline_mode = #tpu.pipeline_mode<synchronous>, transform_indices = @transform_4, window_bounds = array<i64: 3, 128, 128>}, {pipeline_mode = #tpu.pipeline_mode<synchronous>, transform_indices = @transform_5, window_bounds = array<i64: 128, 64>}, {pipeline_mode = #tpu.pipeline_mode<synchronous>, transform_indices = @transform_6, window_bounds = array<i64: 2, 64, 64>}, {pipeline_mode = #tpu.pipeline_mode<synchronous>, transform_indices = @transform_7, window_bounds = array<i64: 64, 32>}, {pipeline_mode = #tpu.pipeline_mode<synchronous>, transform_indices = @transform_8, window_bounds = array<i64: 32, 128>}, {pipeline_mode = #tpu.pipeline_mode<synchronous>, transform_indices = @transform_9, window_bounds = array<i64: 128, 128>}, {pipeline_mode = #tpu.pipeline_mode<synchronous>, transform_indices = @transform_10, window_bounds = array<i64: 16, 256>}, {transform_indices = @transform_11, window_bounds = array<i64: 16, 128>}]} {
    %c0 = arith.constant 0 : index
    %c0_0 = arith.constant 0 : index
    %0 = vector.load %arg1[%c0, %c0_0] : memref<16x64xbf16, #tpu.memory_space<vmem>>, vector<16x64xbf16>
    %c0_1 = arith.constant 0 : index
    %c0_2 = arith.constant 0 : index
    %1 = vector.load %arg2[%c0_1, %c0_2] : memref<64x128xbf16, #tpu.memory_space<vmem>>, vector<64x128xbf16>
    %cst = arith.constant dense<0.000000e+00> : vector<16x128xf32>
    %2 = tpu.matmul %0, %1, %cst {dimension_numbers = #tpu.dot_dimension_numbers<[1], [0], [0], [1], [0, 0, 1, 1], [], []>} : vector<16x64xbf16>, vector<64x128xbf16>, vector<16x128xf32> -> vector<16x128xf32>
    %c0_3 = arith.constant 0 : index
    %c0_4 = arith.constant 0 : index
    %3 = vector.load %arg11[%c0_3, %c0_4] : memref<16x256xf32, #tpu.memory_space<vmem>>, vector<1x128xf32>
    %4 = vector.broadcast %3 : vector<1x128xf32> to vector<16x128xf32>
    %5 = arith.addf %2, %4 : vector<16x128xf32>
    %6 = arith.truncf %5 : vector<16x128xf32> to vector<16x128xbf16>
    %cst_5 = arith.constant 0.000000e+00 : bf16
    %7 = vector.broadcast %cst_5 : bf16 to vector<16x128xbf16>
    %8 = arith.maximumf %6, %7 : vector<16x128xbf16>
    %c0_6 = arith.constant 0 : index
    %c0_7 = arith.constant 0 : index
    %9 = vector.load %arg3[%c0_6, %c0_7] : memref<128x256xbf16, #tpu.memory_space<vmem>>, vector<128x256xbf16>
    %cst_8 = arith.constant dense<0.000000e+00> : vector<16x256xf32>
    %10 = tpu.matmul %8, %9, %cst_8 {dimension_numbers = #tpu.dot_dimension_numbers<[1], [0], [0], [1], [0, 0, 1, 1], [], []>} : vector<16x128xbf16>, vector<128x256xbf16>, vector<16x256xf32> -> vector<16x256xf32>
    %c1 = arith.constant 1 : index
    %c0_9 = arith.constant 0 : index
    %11 = vector.load %arg11[%c1, %c0_9] : memref<16x256xf32, #tpu.memory_space<vmem>>, vector<1x256xf32>
    %12 = vector.broadcast %11 : vector<1x256xf32> to vector<16x256xf32>
    %13 = arith.addf %10, %12 : vector<16x256xf32>
    %14 = arith.truncf %13 : vector<16x256xf32> to vector<16x256xbf16>
    %cst_10 = arith.constant 0.000000e+00 : bf16
    %15 = vector.broadcast %cst_10 : bf16 to vector<16x256xbf16>
    %16 = arith.maximumf %14, %15 : vector<16x256xbf16>
    %c0_11 = arith.constant 0 : index
    %c0_12 = arith.constant 0 : index
    %17 = vector.load %arg4[%c0_11, %c0_12] : memref<256x128xbf16, #tpu.memory_space<vmem>>, vector<256x128xbf16>
    %cst_13 = arith.constant dense<0.000000e+00> : vector<16x128xf32>
    %18 = tpu.matmul %16, %17, %cst_13 {dimension_numbers = #tpu.dot_dimension_numbers<[1], [0], [0], [1], [0, 0, 1, 1], [], []>} : vector<16x256xbf16>, vector<256x128xbf16>, vector<16x128xf32> -> vector<16x128xf32>
    %c2 = arith.constant 2 : index
    %c0_14 = arith.constant 0 : index
    %19 = vector.load %arg11[%c2, %c0_14] : memref<16x256xf32, #tpu.memory_space<vmem>>, vector<1x128xf32>
    %20 = vector.broadcast %19 : vector<1x128xf32> to vector<16x128xf32>
    %21 = arith.addf %18, %20 : vector<16x128xf32>
    %22 = arith.truncf %21 : vector<16x128xf32> to vector<16x128xbf16>
    %c7 = arith.constant 7 : index
    %c0_15 = arith.constant 0 : index
    %23 = vector.load %arg11[%c7, %c0_15] : memref<16x256xf32, #tpu.memory_space<vmem>>, vector<1x128xf32>
    %24 = arith.truncf %23 : vector<1x128xf32> to vector<1x128xbf16>
    %c0_16 = arith.constant 0 : index
    %c0_17 = arith.constant 0 : index
    %c0_18 = arith.constant 0 : index
    %25 = vector.load %arg5[%c0_16, %c0_17, %c0_18] : memref<3x128x128xbf16, #tpu.memory_space<vmem>>, vector<1x128x128xbf16>
    %26 = vector.shape_cast %25 : vector<1x128x128xbf16> to vector<128x128xbf16>
    %cst_19 = arith.constant dense<0.000000e+00> : vector<16x128xf32>
    %27 = tpu.matmul %22, %26, %cst_19 {dimension_numbers = #tpu.dot_dimension_numbers<[1], [0], [0], [1], [0, 0, 1, 1], [], []>} : vector<16x128xbf16>, vector<128x128xbf16>, vector<16x128xf32> -> vector<16x128xf32>
    %c3 = arith.constant 3 : index
    %c0_20 = arith.constant 0 : index
    %28 = vector.load %arg11[%c3, %c0_20] : memref<16x256xf32, #tpu.memory_space<vmem>>, vector<1x128xf32>
    %29 = vector.broadcast %28 : vector<1x128xf32> to vector<16x128xf32>
    %30 = arith.addf %27, %29 : vector<16x128xf32>
    %31 = arith.truncf %30 : vector<16x128xf32> to vector<16x128xbf16>
    %32 = math.tanh %31 : vector<16x128xbf16>
    %33 = vector.broadcast %24 : vector<1x128xbf16> to vector<16x128xbf16>
    %34 = arith.mulf %32, %33 : vector<16x128xbf16>
    %c1_21 = arith.constant 1 : index
    %c0_22 = arith.constant 0 : index
    %c0_23 = arith.constant 0 : index
    %35 = vector.load %arg5[%c1_21, %c0_22, %c0_23] : memref<3x128x128xbf16, #tpu.memory_space<vmem>>, vector<1x128x128xbf16>
    %36 = vector.shape_cast %35 : vector<1x128x128xbf16> to vector<128x128xbf16>
    %cst_24 = arith.constant dense<0.000000e+00> : vector<16x128xf32>
    %37 = tpu.matmul %34, %36, %cst_24 {dimension_numbers = #tpu.dot_dimension_numbers<[1], [0], [0], [1], [0, 0, 1, 1], [], []>} : vector<16x128xbf16>, vector<128x128xbf16>, vector<16x128xf32> -> vector<16x128xf32>
    %c4 = arith.constant 4 : index
    %c0_25 = arith.constant 0 : index
    %38 = vector.load %arg11[%c4, %c0_25] : memref<16x256xf32, #tpu.memory_space<vmem>>, vector<1x128xf32>
    %39 = vector.broadcast %38 : vector<1x128xf32> to vector<16x128xf32>
    %40 = arith.addf %37, %39 : vector<16x128xf32>
    %41 = arith.truncf %40 : vector<16x128xf32> to vector<16x128xbf16>
    %42 = math.tanh %41 : vector<16x128xbf16>
    %43 = vector.broadcast %24 : vector<1x128xbf16> to vector<16x128xbf16>
    %44 = arith.mulf %42, %43 : vector<16x128xbf16>
    %c2_26 = arith.constant 2 : index
    %c0_27 = arith.constant 0 : index
    %c0_28 = arith.constant 0 : index
    %45 = vector.load %arg5[%c2_26, %c0_27, %c0_28] : memref<3x128x128xbf16, #tpu.memory_space<vmem>>, vector<1x128x128xbf16>
    %46 = vector.shape_cast %45 : vector<1x128x128xbf16> to vector<128x128xbf16>
    %cst_29 = arith.constant dense<0.000000e+00> : vector<16x128xf32>
    %47 = tpu.matmul %44, %46, %cst_29 {dimension_numbers = #tpu.dot_dimension_numbers<[1], [0], [0], [1], [0, 0, 1, 1], [], []>} : vector<16x128xbf16>, vector<128x128xbf16>, vector<16x128xf32> -> vector<16x128xf32>
    %c5 = arith.constant 5 : index
    %c0_30 = arith.constant 0 : index
    %48 = vector.load %arg11[%c5, %c0_30] : memref<16x256xf32, #tpu.memory_space<vmem>>, vector<1x128xf32>
    %49 = vector.broadcast %48 : vector<1x128xf32> to vector<16x128xf32>
    %50 = arith.addf %47, %49 : vector<16x128xf32>
    %51 = arith.truncf %50 : vector<16x128xf32> to vector<16x128xbf16>
    %52 = math.tanh %51 : vector<16x128xbf16>
    %53 = vector.broadcast %24 : vector<1x128xbf16> to vector<16x128xbf16>
    %54 = arith.mulf %52, %53 : vector<16x128xbf16>
    %c0_31 = arith.constant 0 : index
    %c0_32 = arith.constant 0 : index
    %55 = vector.load %arg6[%c0_31, %c0_32] : memref<128x64xbf16, #tpu.memory_space<vmem>>, vector<128x64xbf16>
    %cst_33 = arith.constant dense<0.000000e+00> : vector<16x64xf32>
    %56 = tpu.matmul %54, %55, %cst_33 {dimension_numbers = #tpu.dot_dimension_numbers<[1], [0], [0], [1], [0, 0, 1, 1], [], []>} : vector<16x128xbf16>, vector<128x64xbf16>, vector<16x64xf32> -> vector<16x64xf32>
    %c6 = arith.constant 6 : index
    %c0_34 = arith.constant 0 : index
    %57 = vector.load %arg11[%c6, %c0_34] : memref<16x256xf32, #tpu.memory_space<vmem>>, vector<1x64xf32>
    %58 = vector.broadcast %57 : vector<1x64xf32> to vector<16x64xf32>
    %59 = arith.addf %56, %58 : vector<16x64xf32>
    %cst_35 = arith.constant dense<0xFF800000> : vector<16xf32>
    %60 = vector.multi_reduction <maximumf>, %59, %cst_35 [1] : vector<16x64xf32> to vector<16xf32>
    %61 = vector.shape_cast %60 : vector<16xf32> to vector<16x1xf32>
    %62 = vector.broadcast %61 : vector<16x1xf32> to vector<16x64xf32>
    %63 = arith.subf %59, %62 : vector<16x64xf32>
    %64 = math.exp %63 : vector<16x64xf32>
    %cst_36 = arith.constant dense<0.000000e+00> : vector<16xf32>
    %65 = vector.multi_reduction <add>, %64, %cst_36 [1] : vector<16x64xf32> to vector<16xf32>
    %66 = vector.shape_cast %65 : vector<16xf32> to vector<16x1xf32>
    %67 = tpu.reciprocal %66 {approx = true} : vector<16x1xf32> -> vector<16x1xf32>
    %68 = vector.broadcast %67 : vector<16x1xf32> to vector<16x64xf32>
    %69 = arith.mulf %64, %68 : vector<16x64xf32>
    %70 = arith.truncf %69 : vector<16x64xf32> to vector<16x64xbf16>
    %c11 = arith.constant 11 : index
    %c0_37 = arith.constant 0 : index
    %71 = vector.load %arg11[%c11, %c0_37] : memref<16x256xf32, #tpu.memory_space<vmem>>, vector<1x64xf32>
    %72 = arith.truncf %71 : vector<1x64xf32> to vector<1x64xbf16>
    %c0_38 = arith.constant 0 : index
    %c0_39 = arith.constant 0 : index
    %c0_40 = arith.constant 0 : index
    %73 = vector.load %arg7[%c0_38, %c0_39, %c0_40] : memref<2x64x64xbf16, #tpu.memory_space<vmem>>, vector<1x64x64xbf16>
    %74 = vector.shape_cast %73 : vector<1x64x64xbf16> to vector<64x64xbf16>
    %cst_41 = arith.constant dense<0.000000e+00> : vector<16x64xf32>
    %75 = tpu.matmul %70, %74, %cst_41 {dimension_numbers = #tpu.dot_dimension_numbers<[1], [0], [0], [1], [0, 0, 1, 1], [], []>} : vector<16x64xbf16>, vector<64x64xbf16>, vector<16x64xf32> -> vector<16x64xf32>
    %c8 = arith.constant 8 : index
    %c0_42 = arith.constant 0 : index
    %76 = vector.load %arg11[%c8, %c0_42] : memref<16x256xf32, #tpu.memory_space<vmem>>, vector<1x64xf32>
    %77 = vector.broadcast %76 : vector<1x64xf32> to vector<16x64xf32>
    %78 = arith.addf %75, %77 : vector<16x64xf32>
    %79 = arith.truncf %78 : vector<16x64xf32> to vector<16x64xbf16>
    %80 = math.tanh %79 : vector<16x64xbf16>
    %81 = vector.broadcast %72 : vector<1x64xbf16> to vector<16x64xbf16>
    %82 = arith.mulf %80, %81 : vector<16x64xbf16>
    %c1_43 = arith.constant 1 : index
    %c0_44 = arith.constant 0 : index
    %c0_45 = arith.constant 0 : index
    %83 = vector.load %arg7[%c1_43, %c0_44, %c0_45] : memref<2x64x64xbf16, #tpu.memory_space<vmem>>, vector<1x64x64xbf16>
    %84 = vector.shape_cast %83 : vector<1x64x64xbf16> to vector<64x64xbf16>
    %cst_46 = arith.constant dense<0.000000e+00> : vector<16x64xf32>
    %85 = tpu.matmul %82, %84, %cst_46 {dimension_numbers = #tpu.dot_dimension_numbers<[1], [0], [0], [1], [0, 0, 1, 1], [], []>} : vector<16x64xbf16>, vector<64x64xbf16>, vector<16x64xf32> -> vector<16x64xf32>
    %c9 = arith.constant 9 : index
    %c0_47 = arith.constant 0 : index
    %86 = vector.load %arg11[%c9, %c0_47] : memref<16x256xf32, #tpu.memory_space<vmem>>, vector<1x64xf32>
    %87 = vector.broadcast %86 : vector<1x64xf32> to vector<16x64xf32>
    %88 = arith.addf %85, %87 : vector<16x64xf32>
    %89 = arith.truncf %88 : vector<16x64xf32> to vector<16x64xbf16>
    %90 = math.tanh %89 : vector<16x64xbf16>
    %91 = vector.broadcast %72 : vector<1x64xbf16> to vector<16x64xbf16>
    %92 = arith.mulf %90, %91 : vector<16x64xbf16>
    %c0_48 = arith.constant 0 : index
    %c0_49 = arith.constant 0 : index
    %93 = vector.load %arg8[%c0_48, %c0_49] : memref<64x32xbf16, #tpu.memory_space<vmem>>, vector<64x32xbf16>
    %cst_50 = arith.constant dense<0.000000e+00> : vector<16x32xf32>
    %94 = tpu.matmul %92, %93, %cst_50 {dimension_numbers = #tpu.dot_dimension_numbers<[1], [0], [0], [1], [0, 0, 1, 1], [], []>} : vector<16x64xbf16>, vector<64x32xbf16>, vector<16x32xf32> -> vector<16x32xf32>
    %c10 = arith.constant 10 : index
    %c0_51 = arith.constant 0 : index
    %95 = vector.load %arg11[%c10, %c0_51] : memref<16x256xf32, #tpu.memory_space<vmem>>, vector<1x32xf32>
    %96 = vector.broadcast %95 : vector<1x32xf32> to vector<16x32xf32>
    %97 = arith.addf %94, %96 : vector<16x32xf32>
    %cst_52 = arith.constant dense<0xFF800000> : vector<16xf32>
    %98 = vector.multi_reduction <maximumf>, %97, %cst_52 [1] : vector<16x32xf32> to vector<16xf32>
    %99 = vector.shape_cast %98 : vector<16xf32> to vector<16x1xf32>
    %100 = vector.broadcast %99 : vector<16x1xf32> to vector<16x32xf32>
    %101 = arith.subf %97, %100 : vector<16x32xf32>
    %102 = math.exp %101 : vector<16x32xf32>
    %cst_53 = arith.constant dense<0.000000e+00> : vector<16xf32>
    %103 = vector.multi_reduction <add>, %102, %cst_53 [1] : vector<16x32xf32> to vector<16xf32>
    %104 = vector.shape_cast %103 : vector<16xf32> to vector<16x1xf32>
    %105 = tpu.reciprocal %104 {approx = true} : vector<16x1xf32> -> vector<16x1xf32>
    %106 = vector.broadcast %105 : vector<16x1xf32> to vector<16x32xf32>
    %107 = arith.mulf %102, %106 : vector<16x32xf32>
    %108 = arith.truncf %107 : vector<16x32xf32> to vector<16x32xbf16>
    %c0_54 = arith.constant 0 : index
    %c0_55 = arith.constant 0 : index
    %109 = vector.load %arg9[%c0_54, %c0_55] : memref<32x128xbf16, #tpu.memory_space<vmem>>, vector<32x128xbf16>
    %cst_56 = arith.constant dense<0.000000e+00> : vector<16x128xf32>
    %110 = tpu.matmul %108, %109, %cst_56 {dimension_numbers = #tpu.dot_dimension_numbers<[1], [0], [0], [1], [0, 0, 1, 1], [], []>} : vector<16x32xbf16>, vector<32x128xbf16>, vector<16x128xf32> -> vector<16x128xf32>
    %c12 = arith.constant 12 : index
    %c0_57 = arith.constant 0 : index
    %111 = vector.load %arg11[%c12, %c0_57] : memref<16x256xf32, #tpu.memory_space<vmem>>, vector<1x128xf32>
    %112 = vector.broadcast %111 : vector<1x128xf32> to vector<16x128xf32>
    %113 = arith.addf %110, %112 : vector<16x128xf32>
    %114 = arith.truncf %113 : vector<16x128xf32> to vector<16x128xbf16>
    %cst_58 = arith.constant 0.000000e+00 : bf16
    %115 = vector.broadcast %cst_58 : bf16 to vector<16x128xbf16>
    %116 = arith.maximumf %114, %115 : vector<16x128xbf16>
    %c0_59 = arith.constant 0 : index
    %c0_60 = arith.constant 0 : index
    %117 = vector.load %arg10[%c0_59, %c0_60] : memref<128x128xbf16, #tpu.memory_space<vmem>>, vector<128x128xbf16>
    %cst_61 = arith.constant dense<0.000000e+00> : vector<16x128xf32>
    %118 = tpu.matmul %116, %117, %cst_61 {dimension_numbers = #tpu.dot_dimension_numbers<[1], [0], [0], [1], [0, 0, 1, 1], [], []>} : vector<16x128xbf16>, vector<128x128xbf16>, vector<16x128xf32> -> vector<16x128xf32>
    %c13 = arith.constant 13 : index
    %c0_62 = arith.constant 0 : index
    %119 = vector.load %arg11[%c13, %c0_62] : memref<16x256xf32, #tpu.memory_space<vmem>>, vector<1x128xf32>
    %120 = vector.broadcast %119 : vector<1x128xf32> to vector<16x128xf32>
    %121 = arith.addf %118, %120 : vector<16x128xf32>
    %cst_63 = arith.constant 5.000000e-01 : f32
    %122 = vector.broadcast %cst_63 : f32 to vector<16x128xf32>
    %123 = arith.mulf %122, %121 : vector<16x128xf32>
    %124 = math.tanh %123 : vector<16x128xf32>
    %cst_64 = arith.constant 1.000000e+00 : f32
    %125 = vector.broadcast %cst_64 : f32 to vector<16x128xf32>
    %126 = arith.addf %125, %124 : vector<16x128xf32>
    %cst_65 = arith.constant 5.000000e-01 : f32
    %127 = vector.broadcast %cst_65 : f32 to vector<16x128xf32>
    %128 = arith.mulf %127, %126 : vector<16x128xf32>
    %129 = tpu.iota {dimensions = array<i32: 1>} : vector<16x128xi32>
    %c10_i32 = arith.constant 10 : i32
    %130 = vector.broadcast %c10_i32 : i32 to vector<16x128xi32>
    %131 = arith.cmpi eq, %129, %130 : vector<16x128xi32>
    %132 = arith.select %131, %128, %121 : vector<16x128xi1>, vector<16x128xf32>
    %c0_66 = arith.constant 0 : index
    %c0_67 = arith.constant 0 : index
    %133 = vector.load %arg12[%c0_66, %c0_67] : memref<16x128xf32, #tpu.memory_space<vmem>>, vector<16x128xf32>
    tpu.vector_store %arg12[%c0_66, %c0_67], %132 {strides = array<i32>} : memref<16x128xf32, #tpu.memory_space<vmem>>, vector<16x128xf32>,
    return
  }
  func.func @transform_0(%arg0: i32) -> (i32, i32) {
    %c0_i32 = arith.constant 0 : i32
    %c0_i32_0 = arith.constant 0 : i32
    return %arg0, %c0_i32 : i32, i32
  }
  func.func @transform_1(%arg0: i32) -> (i32, i32) {
    %c0_i32 = arith.constant 0 : i32
    %c0_i32_0 = arith.constant 0 : i32
    %c0_i32_1 = arith.constant 0 : i32
    return %c0_i32, %c0_i32_0 : i32, i32
  }
  func.func @transform_2(%arg0: i32) -> (i32, i32) {
    %c0_i32 = arith.constant 0 : i32
    %c0_i32_0 = arith.constant 0 : i32
    %c0_i32_1 = arith.constant 0 : i32
    return %c0_i32, %c0_i32_0 : i32, i32
  }
  func.func @transform_3(%arg0: i32) -> (i32, i32) {
    %c0_i32 = arith.constant 0 : i32
    %c0_i32_0 = arith.constant 0 : i32
    %c0_i32_1 = arith.constant 0 : i32
    return %c0_i32, %c0_i32_0 : i32, i32
  }
  func.func @transform_4(%arg0: i32) -> (i32, i32, i32) {
    %c0_i32 = arith.constant 0 : i32
    %c0_i32_0 = arith.constant 0 : i32
    %c0_i32_1 = arith.constant 0 : i32
    %c0_i32_2 = arith.constant 0 : i32
    return %c0_i32, %c0_i32_0, %c0_i32_1 : i32, i32, i32
  }
  func.func @transform_5(%arg0: i32) -> (i32, i32) {
    %c0_i32 = arith.constant 0 : i32
    %c0_i32_0 = arith.constant 0 : i32
    %c0_i32_1 = arith.constant 0 : i32
    return %c0_i32, %c0_i32_0 : i32, i32
  }
  func.func @transform_6(%arg0: i32) -> (i32, i32, i32) {
    %c0_i32 = arith.constant 0 : i32
    %c0_i32_0 = arith.constant 0 : i32
    %c0_i32_1 = arith.constant 0 : i32
    %c0_i32_2 = arith.constant 0 : i32
    return %c0_i32, %c0_i32_0, %c0_i32_1 : i32, i32, i32
  }
  func.func @transform_7(%arg0: i32) -> (i32, i32) {
    %c0_i32 = arith.constant 0 : i32
    %c0_i32_0 = arith.constant 0 : i32
    %c0_i32_1 = arith.constant 0 : i32
    return %c0_i32, %c0_i32_0 : i32, i32
  }
  func.func @transform_8(%arg0: i32) -> (i32, i32) {
    %c0_i32 = arith.constant 0 : i32
    %c0_i32_0 = arith.constant 0 : i32
    %c0_i32_1 = arith.constant 0 : i32
    return %c0_i32, %c0_i32_0 : i32, i32
  }
  func.func @transform_9(%arg0: i32) -> (i32, i32) {
    %c0_i32 = arith.constant 0 : i32
    %c0_i32_0 = arith.constant 0 : i32
    %c0_i32_1 = arith.constant 0 : i32
    return %c0_i32, %c0_i32_0 : i32, i32
  }
  func.func @transform_10(%arg0: i32) -> (i32, i32) {
    %c0_i32 = arith.constant 0 : i32
    %c0_i32_0 = arith.constant 0 : i32
    %c0_i32_1 = arith.constant 0 : i32
    return %c0_i32, %c0_i32_0 : i32, i32
  }
  func.func @transform_11(%arg0: i32) -> (i32, i32) {
    %c0_i32 = arith.constant 0 : i32
    %c0_i32_0 = arith.constant 0 : i32
    return %arg0, %c0_i32 : i32, i32
  }
}

</mosaic_0001>

<bundles_post_ra>
// kernel: quantum_threat_classifier.1
= control target key start
LH: loop header
LB: loop body
LE: loop exit
PB: predicated region body
PF: predicated region fallthrough
CT: control target
= control target key end

     0   :  { %16 = vsyncpa [#allocation3], 0  ;;  %s2476_s0 = inlined_call_operand.vmem [shape: bf16[16,64], index: 0, kind: input, shape index: {}]   ;;  %s2477_s1 = inlined_call_operand.hbm [shape: bf16[64,128], index: 1, kind: input, shape index: {}]   ;;  %s2478_s2 = inlined_call_operand.vmem [shape: bf16[128,256], index: 2, kind: input, shape index: {}]   ;;  %s2479_s3 = inlined_call_operand.hbm [shape: bf16[256,128], index: 3, kind: input, shape index: {}]   ;;  %s2480_s4 = inlined_call_operand.hbm [shape: bf16[3,128,128], index: 4, kind: input, shape index: {}]   ;;  %s2481_s5 = inlined_call_operand.vmem [shape: bf16[128,64], index: 5, kind: input, shape index: {}]   ;;  %s2482_s6 = inlined_call_operand.hbm [shape: bf16[2,64,64], index: 6, kind: input, shape index: {}]   ;;  %s2483_s7 = inlined_call_operand.vmem [shape: bf16[64,32], index: 7, kind: input, shape index: {}]   ;;  %s2484_s8 = inlined_call_operand.hbm [shape: bf16[32,128], index: 8, kind: input, shape index: {}]   ;;  %s2485_s9 = inlined_call_operand.vmem [shape: bf16[128,128], index: 9, kind: input, shape index: {}]   ;;  %s2486_s10 = inlined_call_operand.hbm [shape: f32[16,256], index: 10, kind: input, shape index: {}]   ;;  %s2487_s11 = inlined_call_operand.vmem [shape: f32[16,128], index: 11, kind: output, shape index: {}]  }
   0x1   :  { %17 = vsyncpa [#allocation5], 0 }
   0x2   :  { %18 = vsyncpa [#allocation8], 0 }
   0x3   :  { %19 = vsyncpa [#allocation11], 0  ;;  %s2075_s17 = smov [#allocation4]   ;;  %s2076_s19 = smov [#allocation7]  }
   0x4   :  { %s41_s18 = sshll.u32 %s2075_s17, 4  ;;  %s67_s20 = sshll.u32 %s2076_s19, 4  ;;  %s42_s18 = int_to_ptr.vmem [resolvable:$true] %s41_s18  ;;  %s2148_s20 = int_to_ptr.vmem [resolvable:$true] %s67_s20 }
   0x5   :  { %s1935_s23 = scalar_lea.hbm %s2479_s3, 2048 }
   0x6   :  { %p1936_p0 = scmp.ne.s32.totalorder %s2479_s3, %s1935_s23  ;;  %p1939_p1 = scmp.lt.u32.totalorder %s1935_s23, %s2479_s3 }
   0x8   :  { %p1941_p2 = pnand %p1939_p1, %p1936_p0 }
   0xa   :  { %1944 = shalt.err (!%p1941_p2)
}
   0xb   :  { %s1945_s28 = scalar_lea.vmem %s42_s18, 2048  ;;  %p1950_p4 = scmp.lt.s32.totalorder %s42_s18, %s42_s18 }
   0xc   :  { %p1946_p3 = scmp.ne.s32.totalorder %s42_s18, %s1945_s28  ;;  %p1951_p5 = scmp.lt.s32.totalorder %s1945_s28, %s1945_s28 }
   0xe   :  { %p1952_p6 = por %p1951_p5, %p1950_p4 }
  0x10   :  { %p1953_p7 = pnand %p1952_p6, %p1946_p3 }
  0x12   :  { %1956 = shalt.err (!%p1953_p7)
}
  0x13   :  { %s2077_s29 = smov 64   ;;  %s2078_s30 = smov 4  }
  0x14   :  { %47 = dma.hbm_to_vmem [thread:$0]  %s2479_s3, 2048, %s42_s18, [#allocation5], %s2077_s29, %s2077_s29, %s2078_s30  }
  0x15   :  { %s1957_s16 = scalar_lea.hbm %s2482_s6, 1024 }
  0x16   :  { %p1958_p8 = scmp.ne.s32.totalorder %s2482_s6, %s1957_s16  ;;  %p1961_p9 = scmp.lt.u32.totalorder %s1957_s16, %s2482_s6 }
  0x18   :  { %p1963_p10 = pnand %p1961_p9, %p1958_p8 }
  0x1a   :  { %1966 = shalt.err (!%p1963_p10)
}
  0x1b   :  { %s1967_s23 = scalar_lea.vmem %s2148_s20, 1024  ;;  %p1972_p12 = scmp.lt.s32.totalorder %s2148_s20, %s2148_s20 }
  0x1c   :  { %p1968_p11 = scmp.ne.s32.totalorder %s2148_s20, %s1967_s23  ;;  %p1973_p13 = scmp.lt.s32.totalorder %s1967_s23, %s1967_s23 }
  0x1e   :  { %p1974_p0 = por %p1973_p13, %p1972_p12 }
  0x20   :  { %p1975_p1 = pnand %p1974_p0, %p1968_p11 }
  0x22   :  { %1978 = shalt.err (!%p1975_p1)
}
  0x23   :  { %73 = dma.hbm_to_vmem [thread:$0]  %s2482_s6, 1024, %s2148_s20, [#allocation8], %s2077_s29, %s2077_s29, %s2078_s30  }
  0x24   :  { %s2079_s24 = smov [#allocation2]   ;;  %s2080_s26 = smov [#allocation6]  }
  0x25   :  { %s27_s25 = sshll.u32 %s2079_s24, 4  ;;  %s53_s27 = sshll.u32 %s2080_s26, 4  ;;  %s28_s25 = int_to_ptr.vmem [resolvable:$true] %s27_s25  ;;  %s2185_s27 = int_to_ptr.vmem [resolvable:$true] %s53_s27 }
  0x26   :  { %s1979_s13 = scalar_lea.hbm %s2477_s1, 512 }
  0x27   :  { %p1980_p2 = scmp.ne.s32.totalorder %s2477_s1, %s1979_s13  ;;  %p1983_p3 = scmp.lt.u32.totalorder %s1979_s13, %s2477_s1 }
  0x29   :  { %p1985_p4 = pnand %p1983_p3, %p1980_p2 }
  0x2b   :  { %1988 = shalt.err (!%p1985_p4)
}
  0x2c   :  { %s1989_s6 = scalar_lea.vmem %s28_s25, 512  ;;  %p1994_p6 = scmp.lt.s32.totalorder %s28_s25, %s28_s25 }
  0x2d   :  { %p1990_p5 = scmp.ne.s32.totalorder %s28_s25, %s1989_s6  ;;  %p1995_p7 = scmp.lt.s32.totalorder %s1989_s6, %s1989_s6 }
  0x2f   :  { %p1996_p8 = por %p1995_p7, %p1994_p6 }
  0x31   :  { %p1997_p9 = pnand %p1996_p8, %p1990_p5 }
  0x33   :  { %2000 = shalt.err (!%p1997_p9)
}
  0x34   :  { %33 = dma.hbm_to_vmem [thread:$0]  %s2477_s1, 512, %s28_s25, [#allocation3], %s2077_s29, %s2077_s29, %s2078_s30  }
  0x35   :  { %s2001_s23 = scalar_lea.hbm %s2480_s4, 3072 }
  0x36   :  { %p2002_p10 = scmp.ne.s32.totalorder %s2480_s4, %s2001_s23  ;;  %p2005_p11 = scmp.lt.u32.totalorder %s2001_s23, %s2480_s4 }
  0x38   :  { %p2007_p12 = pnand %p2005_p11, %p2002_p10 }
  0x3a   :  { %2010 = shalt.err (!%p2007_p12)
}
  0x3b   :  { %s2011_s28 = scalar_lea.vmem %s2185_s27, 3072  ;;  %p2016_p0 = scmp.lt.s32.totalorder %s2185_s27, %s2185_s27 }
  0x3c   :  { %p2012_p13 = scmp.ne.s32.totalorder %s2185_s27, %s2011_s28  ;;  %p2017_p1 = scmp.lt.s32.totalorder %s2011_s28, %s2011_s28 }
  0x3e   :  { %p2018_p2 = por %p2017_p1, %p2016_p0 }
  0x40   :  { %p2019_p3 = pnand %p2018_p2, %p2012_p13 }
  0x42   :  { %2022 = shalt.err (!%p2019_p3)
}
  0x43   :  { %59 = dma.hbm_to_vmem [thread:$0]  %s2480_s4, 3072, %s2185_s27, [#allocation5], %s2077_s29, %s2077_s29, %s2078_s30  }
  0x44   :  { %s2081_s12 = smov [#allocation9]   ;;  %s2082_s14 = smov [#allocation10]  }
  0x45   :  { %s81_s13 = sshll.u32 %s2081_s12, 4  ;;  %s95_s15 = sshll.u32 %s2082_s14, 4  ;;  %s82_s13 = int_to_ptr.vmem [resolvable:$true] %s81_s13  ;;  %s2222_s15 = int_to_ptr.vmem [resolvable:$true] %s95_s15 }
  0x46   :  { %s2023_s6 = scalar_lea.hbm %s2484_s8, 256 }
  0x47   :  { %p2024_p4 = scmp.ne.s32.totalorder %s2484_s8, %s2023_s6  ;;  %p2027_p5 = scmp.lt.u32.totalorder %s2023_s6, %s2484_s8 }
  0x49   :  { %p2029_p6 = pnand %p2027_p5, %p2024_p4 }
  0x4b   :  { %2032 = shalt.err (!%p2029_p6)
}
  0x4c   :  { %s2033_s4 = scalar_lea.vmem %s82_s13, 256  ;;  %p2038_p8 = scmp.lt.s32.totalorder %s82_s13, %s82_s13 }
  0x4d   :  { %p2034_p7 = scmp.ne.s32.totalorder %s82_s13, %s2033_s4  ;;  %p2039_p9 = scmp.lt.s32.totalorder %s2033_s4, %s2033_s4 }
  0x4f   :  { %p2040_p10 = por %p2039_p9, %p2038_p8 }
  0x51   :  { %p2041_p11 = pnand %p2040_p10, %p2034_p7 }
  0x53   :  { %2044 = shalt.err (!%p2041_p11)
}
  0x54   :  { %87 = dma.hbm_to_vmem [thread:$0]  %s2484_s8, 256, %s82_s13, [#allocation8], %s2077_s29, %s2077_s29, %s2078_s30  }
  0x55   :  { %s2045_s24 = scalar_lea.hbm %s2486_s10, 512 }
  0x56   :  { %p2046_p12 = scmp.ne.s32.totalorder %s2486_s10, %s2045_s24  ;;  %p2049_p13 = scmp.lt.u32.totalorder %s2045_s24, %s2486_s10 }
  0x58   :  { %p2051_p0 = pnand %p2049_p13, %p2046_p12 }
  0x5a   :  { %2054 = shalt.err (!%p2051_p0)
}
  0x5b   :  { %s2055_s12 = scalar_lea.vmem %s2222_s15, 512  ;;  %p2060_p2 = scmp.lt.s32.totalorder %s2222_s15, %s2222_s15 }
  0x5c   :  { %p2056_p1 = scmp.ne.s32.totalorder %s2222_s15, %s2055_s12  ;;  %p2061_p3 = scmp.lt.s32.totalorder %s2055_s12, %s2055_s12 }
  0x5e   :  { %p2062_p4 = por %p2061_p3, %p2060_p2 }
  0x60   :  { %p2063_p5 = pnand %p2062_p4, %p2056_p1 }
  0x62   :  { %2066 = shalt.err (!%p2063_p5)
}
  0x63   :  { %s2083_s8 = smov 256   ;;  %s2084_s29 = smov 16  }
  0x64   :  { %101 = dma.hbm_to_vmem [thread:$0]  %s2486_s10, 512, %s2222_s15, [#allocation11], %s2083_s8, %s2083_s8, %s2084_s29  }
  0x65   :  { %2067 = dma.done.wait [#allocation3], 512  }
  0x66   :  { %2068 = vsyncadd [#allocation3], 4294966784 }
  0x67   :  { %2069 = dma.done.wait [#allocation5], 5120  }
  0x68   :  { %2070 = vsyncadd [#allocation5], 4294962176 }
  0x69   :  { %2071 = dma.done.wait [#allocation8], 1280  }
  0x6a   :  { %2072 = vsyncadd [#allocation8], 4294966016 }
  0x6b   :  { %2073 = dma.done.wait [#allocation11], 512  }
  0x6c   :  { %2074 = vsyncadd [#allocation11], 4294966784  ;;  %v2085_v0 = vmov 0.0   ;;  %vm2086_vm0 = vmmov 0   ;;  %v1806_v1 = vld [vmem:[#allocation2] sm:$0xff]   ;;  %v1807_v2 = vld [vmem:[#allocation2 + $0x8] sm:$0xff]   ;;  %v227_v54 = vlaneseq }
  0x6d   :  { %1637 = vmatprep.subr.bf16.mxu0 %v2085_v0  ;;  %1645 = vmatprep.mubr.msk.bf16.mxu0 %vm2086_vm0, %v2085_v0  ;;  %v1808_v3 = vld [vmem:[#allocation2 + $0x10] sm:$0xff]   ;;  %v1811_v4 = vld [vmem:[%s2478_s2 + $0x4] ss:$8 sps:$4 sm:$0xff]   ;;  %v1813_v5 = vld [vmem:[%s2478_s2] ss:$8 sps:$4 sm:$0xff]   ;;  %vm161_vm1 = vcmask 523264  }
  0x6e   :  { %1638 = vmatpush3.bf16.msra.mxu0 %v1806_v1  ;;  %317 = vmatprep.subr.bf16.mxu1 %v1811_v4  ;;  %v1814_v6 = vld [vmem:[%s2478_s2 + $0x14] ss:$8 sps:$4 sm:$0xff]   ;;  %v1816_v7 = vld [vmem:[%s2478_s2 + $0x10] ss:$8 sps:$4 sm:$0xff]   ;;  %v1817_v8 = vld [vmem:[%s2478_s2 + $0x24] ss:$8 sps:$4 sm:$0xff]  }
  0x6f   :  { %1639 = vmatprep.subr.bf16.mxu0 %v2085_v0  ;;  %318 = vmatpush1.bf16.msra.mxu1 %v1813_v5  ;;  %v1809_v9 = vld [vmem:[#allocation2 + $0x18] sm:$0xff]   ;;  %v1810_v10 = vld [vmem:[%s2476_s0] sm:$0xff]   ;;  %v2087_v22 = vmov 0   ;;  %v1837_v25 = vld [vmem:[#allocation4 + $0x48] sm:$0xff]   ;;  %v228_v55 = vshrl.u32 %v227_v54, 7  ;;  %vm1235_vm2 = vcmask 261120  }
  0x70   :  { %319 = vmatprep.subr.bf16.mxu1 %v1814_v6  ;;  %v1819_v11 = vld [vmem:[%s2478_s2 + $0x20] ss:$8 sps:$4 sm:$0xff]   ;;  %v1820_v12 = vld [vmem:[%s2478_s2 + $0x34] ss:$8 sps:$4 sm:$0xff]   ;;  %v1822_v13 = vld [vmem:[%s2478_s2 + $0x30] ss:$8 sps:$4 sm:$0xff]   ;;  %349 = vmatprep.mubr.bf16.mxu1 %v2087_v22 }
  0x71   :  { %v1823_v14 = vld [vmem:[%s2478_s2 + $0x44] ss:$8 sps:$4 sm:$0xff]   ;;  %v1825_v15 = vld [vmem:[%s2478_s2 + $0x40] ss:$8 sps:$4 sm:$0xff]   ;;  %v1826_v16 = vld [vmem:[%s2478_s2 + $0x54] ss:$8 sps:$4 sm:$0xff]  }
  0x72   :  { %1640 = vmatpush3.bf16.msra.mxu0 %v1807_v2  ;;  %v1828_v17 = vld [vmem:[%s2478_s2 + $0x50] ss:$8 sps:$4 sm:$0xff]   ;;  %v1829_v18 = vld [vmem:[%s2478_s2 + $0x64] ss:$8 sps:$4 sm:$0xff]   ;;  %v1831_v19 = vld [vmem:[%s2478_s2 + $0x60] ss:$8 sps:$4 sm:$0xff]  }
  0x73   :  { %1641 = vmatprep.subr.bf16.mxu0 %v2085_v0  ;;  %320 = vmatpush1.bf16.msra.mxu1 %v1816_v7  ;;  %v1832_v20 = vld [vmem:[%s2478_s2 + $0x74] ss:$8 sps:$4 sm:$0xff]   ;;  %v1834_v21 = vld [vmem:[%s2478_s2 + $0x70] ss:$8 sps:$4 sm:$0xff]   ;;  %v1835_v23 = vld [vmem:[#allocation4 + $0x40] sm:$0xff]   ;;  %v229_v56 = vsub.s32 0, %v228_v55 }
  0x74   :  { %321 = vmatprep.subr.bf16.mxu1 %v1817_v8  ;;  %v1836_v24 = vld [vmem:[#allocation4] sm:$0xff]   ;;  %v1838_v26 = vld [vmem:[#allocation4 + $0x8] sm:$0xff]   ;;  %v1839_v27 = vld [vmem:[#allocation4 + $0x50] sm:$0xff]   ;;  %v233_v58 = vsub.s32 1, %v228_v55 }
  0x75   :  { %v1840_v28 = vld [vmem:[#allocation4 + $0x10] sm:$0xff]   ;;  %v1841_v29 = vld [vmem:[#allocation4 + $0x58] sm:$0xff]   ;;  %v1843_v31 = vld [vmem:[#allocation4 + $0x60] sm:$0xff]  }
  0x76   :  { %1642 = vmatpush3.bf16.msra.mxu0 %v1808_v3  ;;  %v1842_v30 = vld [vmem:[#allocation4 + $0x18] sm:$0xff]   ;;  %v1844_v32 = vld [vmem:[#allocation4 + $0x20] sm:$0xff]   ;;  %v1845_v33 = vld [vmem:[#allocation4 + $0x68] sm:$0xff]  }
  0x77   :  { %1643 = vmatprep.subr.bf16.mxu0 %v2085_v0  ;;  %322 = vmatpush1.bf16.msra.mxu1 %v1819_v11  ;;  %v131_v34 = vld [vmem:[#allocation10] ss:$0 sm:$0xff]  ;;  %v1846_v43 = vld [vmem:[#allocation4 + $0x28] sm:$0xff]   ;;  %v1849_v46 = vld [vmem:[#allocation4 + $0x78] sm:$0xff]  }
  0x78   :  { %323 = vmatprep.subr.bf16.mxu1 %v1820_v12  ;;  %v1847_v44 = vld [vmem:[#allocation4 + $0x70] sm:$0xff]   ;;  %v1850_v47 = vld [vmem:[#allocation4 + $0x38] sm:$0xff]   ;;  %v1851_v48 = vld [vmem:[#allocation6] sm:$0xff]  }
  0x79   :  { %v1848_v45 = vld [vmem:[#allocation4 + $0x30] sm:$0xff]   ;;  %v1852_v49 = vld [vmem:[#allocation6 + $0x8] sm:$0xff]   ;;  %v1854_v51 = vld [vmem:[#allocation6 + $0x18] sm:$0xff]  }
  0x7a   :  { %1644 = vmatpush3.bf16.msra.mxu0 %v1809_v9  ;;  %v1853_v50 = vld [vmem:[#allocation6 + $0x10] sm:$0xff]   ;;  %v1855_v52 = vld [vmem:[#allocation6 + $0x20] sm:$0xff]   ;;  %v1856_v53 = vld [vmem:[#allocation6 + $0x28] sm:$0xff]  }
  0x7b   :  { %324 = vmatpush1.bf16.msra.mxu1 %v1822_v13  ;;  %1552 = vmatprep.subr.bf16.mxu0 %v1835_v23  ;;  %v225_v57 = vld [vmem:[#allocation10 + $0x1] ss:$8 sm:$0x3]  ;;  %v1859_v12 = vld [vmem:[#allocation6 + $0x40] sm:$0xff]   ;;  %v1860_v13 = vld [vmem:[#allocation6 + $0x48] sm:$0xff]  }
  0x7c   :  { %325 = vmatprep.subr.bf16.mxu1 %v1823_v14  ;;  %v230_v59 = vrot.slane %v225_v57, %v229_v56  ;;  %v234_v61 = vrot.slane %v225_v57, %v233_v58  ;;  %v1858_v11 = vld [vmem:[#allocation6 + $0x38] sm:$0xff]   ;;  %v1861_v14 = vld [vmem:[#allocation6 + $0x50] sm:$0xff]  }
  0x7d   :  { %1646 = vmatmul.mubr.msk.bf16.vlgmr.msra.gmra.mrb[0].mxu0 %vm161_vm1, %v1810_v10  ;;  %v1857_v10 = vld [vmem:[#allocation6 + $0x30] sm:$0xff]  }
  0x7e   :  { %1553 = vmatpush3.bf16.msra.mxu0 %v1836_v24  ;;  %v663_v55 = vld [vmem:[#allocation10 + $0x4] ss:$0 sm:$0xff] }
  0x7f   :  { %326 = vmatpush1.bf16.msra.mxu1 %v1825_v15  ;;  %1554 = vmatprep.subr.bf16.mxu0 %v1837_v25 }
  0x80   :  { %327 = vmatprep.subr.bf16.mxu1 %v1826_v16 }
  0x82   :  { %1555 = vmatpush3.bf16.msra.mxu0 %v1838_v26  ;;  %v1862_v26 = vld [vmem:[#allocation6 + $0x58] sm:$0xff]  }
  0x83   :  { %328 = vmatpush1.bf16.msra.mxu1 %v1828_v17  ;;  %1556 = vmatprep.subr.bf16.mxu0 %v1839_v27  ;;  %v1863_v27 = vld [vmem:[#allocation6 + $0x60] sm:$0xff]  }
  0x84   :  { %329 = vmatprep.subr.bf16.mxu1 %v1829_v18 }
  0x86   :  { %1557 = vmatpush3.bf16.msra.mxu0 %v1840_v28  ;;  %v1864_v28 = vld [vmem:[#allocation6 + $0x68] sm:$0xff]  }
  0x87   :  { %330 = vmatpush1.bf16.msra.mxu1 %v1831_v19  ;;  %1558 = vmatprep.subr.bf16.mxu0 %v1841_v29  ;;  %v396_v19 = vld [vmem:[#allocation10 + $0x2] ss:$0 sm:$0xff] }
  0x88   :  { %331 = vmatprep.subr.bf16.mxu1 %v1832_v20  ;;  %v1865_v29 = vld [vmem:[#allocation6 + $0x70] sm:$0xff]  }
  0x8a   :  { %1559 = vmatpush3.bf16.msra.mxu0 %v1842_v30  ;;  %v1866_v30 = vld [vmem:[#allocation6 + $0x78] sm:$0xff]  }
  0x8b   :  { %332 = vmatpush1.bf16.msra.mxu1 %v1834_v21  ;;  %1560 = vmatprep.subr.bf16.mxu0 %v1843_v31  ;;  %v1867_v31 = vld [vmem:[#allocation6 + $0x80] sm:$0xff]  }
  0x8c   :  { %1649 = vmatprep.subr.bf16.mxu1 %v2085_v0 }
  0x8e   :  { %1561 = vmatpush3.bf16.msra.mxu0 %v1844_v32  ;;  %v1868_v32 = vld [vmem:[#allocation6 + $0x88] sm:$0xff]  }
  0x8f   :  { %1562 = vmatprep.subr.bf16.mxu0 %v1845_v33  ;;  %v1869_v33 = vld [vmem:[#allocation6 + $0x90] sm:$0xff]  }
  0x92   :  { %1563 = vmatpush3.bf16.msra.mxu0 %v1846_v43 }
  0x93   :  { %1564 = vmatprep.subr.bf16.mxu0 %v1847_v44 }
  0x96   :  { %1565 = vmatpush3.bf16.msra.mxu0 %v1848_v45 }
  0x97   :  { %1566 = vmatprep.subr.bf16.mxu0 %v1849_v46  ;;  %v1870_v46 = vld [vmem:[#allocation6 + $0x98] sm:$0xff]  }
  0x9a   :  { %1567 = vmatpush3.bf16.msra.mxu0 %v1850_v47  ;;  %v1871_v47 = vld [vmem:[#allocation6 + $0xa0] sm:$0xff]  }
  0x9b   :  { %1669 = vmatprep.subr.bf16.mxu0 %v2085_v0 }
 0x150   :  { %v199_v35 = vpop.f32.mrb[0].mxu0 }
 0x151   :  { %v1647_v36 = vpop.f32.mrb[1].mxu0  ;;  %v200_v38 = vadd.f32 %v199_v35, %v131_v34 }
 0x152   :  { %v202_v37 = vpop.f32.mrb[2].mxu0 }
 0x153   :  { %v203_v39 = vadd.f32 %v202_v37, %v131_v34  ;;  %v1648_v40 = vpop.f32.mrb[3].mxu0  ;;  %v553_v34 = vld [vmem:[#allocation10 + $0x3] ss:$0 sm:$0xff] }
 0x155   :  { %v206_v41 = vpack.c.bf16 %v203_v39, %v200_v38 }
 0x157   :  { %v207_v42 = vmax.bf16 %v2087_v22, %v206_v41 }
 0x159   :  { %350 = vmatmul.mubr.bf16.vlgmr.msra.gmra.mrb[0].mxu1 %v207_v42  ;;  %v535_v42 = vld [vmem:[#allocation10 + $0x7] ss:$0 sm:$0xff] }
 0x15a   :  { %1665 = vmatprep.mubr.msk.bf16.mxu1 %vm2086_vm0, %v2085_v0  ;;  %1650 = vmatpush3.bf16.msra.mxu1 %v1851_v48  ;;  %v2346_v43 = vpack.c.bf16 %v535_v42, %v535_v42  ;;  %v1872_v48 = vld [vmem:[#allocation6 + $0xa8] sm:$0xff]  }
 0x15b   :  { %1651 = vmatprep.subr.bf16.mxu1 %v2085_v0 }
 0x15e   :  { %1652 = vmatpush3.bf16.msra.mxu1 %v1852_v49  ;;  %v1873_v49 = vld [vmem:[#allocation6 + $0xb0] sm:$0xff]  }
 0x15f   :  { %1653 = vmatprep.subr.bf16.mxu1 %v2085_v0 }
 0x162   :  { %1654 = vmatpush3.bf16.msra.mxu1 %v1853_v50  ;;  %v1874_v50 = vld [vmem:[#allocation6 + $0xb8] sm:$0xff]  }
 0x163   :  { %1655 = vmatprep.subr.bf16.mxu1 %v2085_v0 }
 0x166   :  { %1656 = vmatpush3.bf16.msra.mxu1 %v1854_v51  ;;  %v1875_v51 = vld [vmem:[%s2481_s5] sm:$0xff]  }
 0x167   :  { %1657 = vmatprep.subr.bf16.mxu1 %v2085_v0 }
 0x16a   :  { %1658 = vmatpush3.bf16.msra.mxu1 %v1855_v52  ;;  %v1876_v52 = vld [vmem:[%s2481_s5 + $0x8] sm:$0xff]  }
 0x16b   :  { %1659 = vmatprep.subr.bf16.mxu1 %v2085_v0 }
 0x16e   :  { %1660 = vmatpush3.bf16.msra.mxu1 %v1856_v53  ;;  %v1877_v53 = vld [vmem:[%s2481_s5 + $0x10] sm:$0xff]  }
 0x16f   :  { %1661 = vmatprep.subr.bf16.mxu1 %v2085_v0 }
 0x172   :  { %1662 = vmatpush3.bf16.msra.mxu1 %v1857_v10 }
 0x173   :  { %1663 = vmatprep.subr.bf16.mxu1 %v2085_v0 }
 0x176   :  { %1664 = vmatpush3.bf16.msra.mxu1 %v1858_v11 }
 0x177   :  { %1689 = vmatprep.subr.bf16.mxu1 %v2085_v0 }
 0x22c   :  { %v351_v60 = vpop.f32.mrb[0].mxu1 }
 0x22d   :  { %v353_v62 = vpop.f32.mrb[1].mxu1  ;;  %v352_v1 = vadd.f32 %v351_v60, %v230_v59 }
 0x22e   :  { %v355_v63 = vpop.f32.mrb[2].mxu1  ;;  %v354_v4 = vadd.f32 %v353_v62, %v234_v61 }
 0x22f   :  { %v356_v2 = vadd.f32 %v355_v63, %v230_v59  ;;  %v357_v3 = vpop.f32.mrb[3].mxu1 }
 0x230   :  { %v358_v5 = vadd.f32 %v357_v3, %v234_v61  ;;  %v1879_v3 = vld [vmem:[%s2481_s5 + $0x20] sm:$0xff]  }
 0x231   :  { %v360_v6 = vpack.c.bf16 %v356_v2, %v352_v1  ;;  %v1878_v2 = vld [vmem:[%s2481_s5 + $0x18] sm:$0xff]  }
 0x232   :  { %v361_v7 = vpack.c.bf16 %v358_v5, %v354_v4  ;;  %v1880_v4 = vld [vmem:[%s2481_s5 + $0x28] sm:$0xff]   ;;  %v1881_v5 = vld [vmem:[%s2481_s5 + $0x30] sm:$0xff]  }
 0x233   :  { %v362_v9 = vmax.bf16 %v2087_v22, %v360_v6  ;;  %v1882_v6 = vld [vmem:[%s2481_s5 + $0x38] sm:$0xff]  }
 0x234   :  { %v363_v8 = vmax.bf16 %v2087_v22, %v361_v7  ;;  %v773_v7 = vld [vmem:[#allocation10 + $0x5] ss:$0 sm:$0xff] }
 0x236   :  { %525 = vmatprep.mubr.bf16.mxu0 %v363_v8 }
 0x237   :  { %526 = vmatmul.mubr.bf16.vlgmr.msra.gmra.mrb[4].mxu0 %v362_v9 }
 0x238   :  { %1685 = vmatprep.mubr.msk.bf16.mxu0 %vm2086_vm0, %v2085_v0  ;;  %1670 = vmatpush3.bf16.msra.mxu0 %v1859_v12 }
 0x239   :  { %1671 = vmatprep.subr.bf16.mxu0 %v2085_v0 }
 0x23c   :  { %1672 = vmatpush3.bf16.msra.mxu0 %v1860_v13 }
 0x23d   :  { %1673 = vmatprep.subr.bf16.mxu0 %v2085_v0 }
 0x240   :  { %1674 = vmatpush3.bf16.msra.mxu0 %v1861_v14 }
 0x241   :  { %1675 = vmatprep.subr.bf16.mxu0 %v2085_v0 }
 0x244   :  { %1676 = vmatpush3.bf16.msra.mxu0 %v1862_v26 }
 0x245   :  { %1677 = vmatprep.subr.bf16.mxu0 %v2085_v0 }
 0x248   :  { %1678 = vmatpush3.bf16.msra.mxu0 %v1863_v27 }
 0x249   :  { %1679 = vmatprep.subr.bf16.mxu0 %v2085_v0 }
 0x24c   :  { %1680 = vmatpush3.bf16.msra.mxu0 %v1864_v28 }
 0x24d   :  { %1681 = vmatprep.subr.bf16.mxu0 %v2085_v0 }
 0x250   :  { %1682 = vmatpush3.bf16.msra.mxu0 %v1865_v29 }
 0x251   :  { %1683 = vmatprep.subr.bf16.mxu0 %v2085_v0 }
 0x254   :  { %1684 = vmatpush3.bf16.msra.mxu0 %v1866_v30 }
 0x255   :  { %1709 = vmatprep.subr.bf16.mxu0 %v2085_v0 }
 0x30a   :  { %v1568_v15 = vpop.f32.mrb[4].mxu0 }
 0x30b   :  { %v1569_v16 = vpop.f32.mrb[5].mxu0 }
 0x30c   :  { %v1570_v17 = vadd.f32 %v1569_v16, %v1568_v15  ;;  %v1571_v18 = vpop.f32.mrb[6].mxu0 }
 0x30d   :  { %v1572_v20 = vpop.f32.mrb[7].mxu0 }
 0x30e   :  { %v1573_v21 = vadd.f32 %v1572_v20, %v1571_v18  ;;  %v528_v23 = vadd.f32 %v1570_v17, %v396_v19  ;;  %v882_v17 = vld [vmem:[#allocation10 + $0x6] ss:$0 sm:$0xff] }
 0x310   :  { %v531_v24 = vadd.f32 %v1573_v21, %v396_v19 }
 0x312   :  { %v534_v25 = vpack.c.bf16 %v531_v24, %v528_v23 }
 0x314   :  { %1666 = vmatmul.mubr.bf16.vlgmr.msra.gmra.mrb[4].mxu1 %v534_v25 }
 0x315   :  { %1705 = vmatprep.mubr.msk.bf16.mxu1 %vm2086_vm0, %v2085_v0  ;;  %1690 = vmatpush3.bf16.msra.mxu1 %v1867_v31 }
 0x316   :  { %1691 = vmatprep.subr.bf16.mxu1 %v2085_v0 }
 0x319   :  { %1692 = vmatpush3.bf16.msra.mxu1 %v1868_v32 }
 0x31a   :  { %1693 = vmatprep.subr.bf16.mxu1 %v2085_v0 }
 0x31d   :  { %1694 = vmatpush3.bf16.msra.mxu1 %v1869_v33 }
 0x31e   :  { %1695 = vmatprep.subr.bf16.mxu1 %v2085_v0 }
 0x321   :  { %1696 = vmatpush3.bf16.msra.mxu1 %v1870_v46 }
 0x322   :  { %1697 = vmatprep.subr.bf16.mxu1 %v2085_v0 }
 0x325   :  { %1698 = vmatpush3.bf16.msra.mxu1 %v1871_v47 }
 0x326   :  { %1699 = vmatprep.subr.bf16.mxu1 %v2085_v0 }
 0x329   :  { %1700 = vmatpush3.bf16.msra.mxu1 %v1872_v48  ;;  %v1887_v48 = vld [vmem:[#allocation7 + $0x20] sm:$0xff]  }
 0x32a   :  { %1701 = vmatprep.subr.bf16.mxu1 %v2085_v0 }
 0x32d   :  { %1702 = vmatpush3.bf16.msra.mxu1 %v1873_v49  ;;  %v1888_v49 = vld [vmem:[#allocation7 + $0x28] sm:$0xff]  }
 0x32e   :  { %1703 = vmatprep.subr.bf16.mxu1 %v2085_v0 }
 0x331   :  { %1704 = vmatpush3.bf16.msra.mxu1 %v1874_v50  ;;  %v1889_v50 = vld [vmem:[#allocation7 + $0x30] sm:$0xff]  }
 0x332   :  { %1753 = vmatprep.subr.bf16.mxu1 %v2085_v0 }
 0x3e7   :  { %v636_v35 = vpop.f32.mrb[4].mxu1 }
 0x3e8   :  { %v1667_v36 = vpop.f32.mrb[5].mxu1  ;;  %v637_v38 = vadd.f32 %v636_v35, %v553_v34 }
 0x3e9   :  { %v639_v37 = vpop.f32.mrb[6].mxu1 }
 0x3ea   :  { %v640_v39 = vadd.f32 %v639_v37, %v553_v34  ;;  %v1668_v40 = vpop.f32.mrb[7].mxu1  ;;  %v1883_v37 = vld [vmem:[#allocation7] sm:$0xff]  }
 0x3eb   :  { %v1886_v40 = vld [vmem:[#allocation7 + $0x18] sm:$0xff]  }
 0x3ec   :  { %v643_v41 = vpack.c.bf16 %v640_v39, %v637_v38  ;;  %v1884_v38 = vld [vmem:[#allocation7 + $0x8] sm:$0xff]   ;;  %v1885_v39 = vld [vmem:[#allocation7 + $0x10] sm:$0xff]  }
 0x3ee   :  { %1905 = vtanh.bf16 %v643_v41 }
 0x3f9   :  { %v1906_v44 = vpop.eup %1905 }
 0x3fa   :  { %v645_v45 = vmul.bf16 %v1906_v44, %v2346_v43 }
 0x3fc   :  { %1686 = vmatmul.mubr.bf16.vlgmr.msra.gmra.mrb[8].mxu0 %v645_v45 }
 0x3fd   :  { %1725 = vmatprep.mubr.msk.bf16.mxu0 %vm2086_vm0, %v2085_v0  ;;  %1710 = vmatpush3.bf16.msra.mxu0 %v1875_v51  ;;  %v1890_v51 = vld [vmem:[#allocation7 + $0x38] sm:$0xff]  }
 0x3fe   :  { %1711 = vmatprep.subr.bf16.mxu0 %v2085_v0 }
 0x401   :  { %1712 = vmatpush3.bf16.msra.mxu0 %v1876_v52  ;;  %v1005_v52 = vld [vmem:[#allocation10 + $0x10] ss:$0 sm:$0xff] }
 0x402   :  { %1713 = vmatprep.subr.bf16.mxu0 %v2085_v0 }
 0x405   :  { %1714 = vmatpush3.bf16.msra.mxu0 %v1877_v53 }
 0x406   :  { %1715 = vmatprep.subr.bf16.mxu0 %v2085_v0 }
 0x409   :  { %1716 = vmatpush3.bf16.msra.mxu0 %v1878_v2  ;;  %v1891_v2 = vld [vmem:[%s2483_s7] sm:$0xff]  }
 0x40a   :  { %1717 = vmatprep.subr.bf16.mxu0 %v2085_v0 }
 0x40d   :  { %1718 = vmatpush3.bf16.msra.mxu0 %v1879_v3  ;;  %v1892_v3 = vld [vmem:[%s2483_s7 + $0x8] sm:$0xff]  }
 0x40e   :  { %1719 = vmatprep.subr.bf16.mxu0 %v2085_v0 }
 0x411   :  { %1720 = vmatpush3.bf16.msra.mxu0 %v1880_v4  ;;  %v1893_v4 = vld [vmem:[%s2483_s7 + $0x10] sm:$0xff]  }
 0x412   :  { %1721 = vmatprep.subr.bf16.mxu0 %v2085_v0 }
 0x415   :  { %1722 = vmatpush3.bf16.msra.mxu0 %v1881_v5  ;;  %v1894_v5 = vld [vmem:[%s2483_s7 + $0x18] sm:$0xff]  }
 0x416   :  { %1723 = vmatprep.subr.bf16.mxu0 %v2085_v0 }
 0x419   :  { %1724 = vmatpush3.bf16.msra.mxu0 %v1882_v6  ;;  %v1086_v6 = vld [vmem:[#allocation10 + $0x11] ss:$0 sm:$0xff] }
 0x41a   :  { %1729 = vmatprep.subr.bf16.mxu0 %v2085_v0 }
 0x4cf   :  { %v746_v56 = vpop.f32.mrb[8].mxu0 }
 0x4d0   :  { %v1687_v57 = vpop.f32.mrb[9].mxu0  ;;  %v747_v59 = vadd.f32 %v746_v56, %v663_v55 }
 0x4d1   :  { %v749_v58 = vpop.f32.mrb[10].mxu0 }
 0x4d2   :  { %v750_v60 = vadd.f32 %v749_v58, %v663_v55  ;;  %v1688_v61 = vpop.f32.mrb[11].mxu0 }
 0x4d3   :  { %v995_v61 = vld [vmem:[#allocation10 + $0x13] ss:$0 sm:$0xff] }
 0x4d4   :  { %v753_v62 = vpack.c.bf16 %v750_v60, %v747_v59 }
 0x4d6   :  { %1907 = vtanh.bf16 %v753_v62  ;;  %v996_v62 = vpack.c.bf16 %v995_v61, %v995_v61 }
 0x4e1   :  { %v1908_v63 = vpop.eup %1907 }
 0x4e2   :  { %v755_v1 = vmul.bf16 %v1908_v63, %v2346_v43 }
 0x4e4   :  { %1706 = vmatmul.mubr.bf16.vlgmr.msra.gmra.mrb[8].mxu1 %v755_v1 }
 0x4e5   :  { %1761 = vmatprep.mubr.msk.bf16.mxu1 %vm2086_vm0, %v2085_v0  ;;  %1754 = vmatpush3.bf16.msra.mxu1 %v1891_v2 }
 0x4e6   :  { %1755 = vmatprep.subr.bf16.mxu1 %v2085_v0 }
 0x4e9   :  { %1756 = vmatpush3.bf16.msra.mxu1 %v1892_v3 }
 0x4ea   :  { %1757 = vmatprep.subr.bf16.mxu1 %v2085_v0 }
 0x4ed   :  { %1758 = vmatpush3.bf16.msra.mxu1 %v1893_v4 }
 0x4ee   :  { %1759 = vmatprep.subr.bf16.mxu1 %v2085_v0 }
 0x4f1   :  { %1760 = vmatpush3.bf16.msra.mxu1 %v1894_v5 }
 0x4f2   :  { %1773 = vmatprep.subr.bf16.mxu1 %v2085_v0 }
 0x5b7   :  { %v856_v8 = vpop.f32.mrb[8].mxu1 }
 0x5b8   :  { %v1707_v9 = vpop.f32.mrb[9].mxu1  ;;  %v857_v11 = vadd.f32 %v856_v8, %v773_v7 }
 0x5b9   :  { %v859_v10 = vpop.f32.mrb[10].mxu1 }
 0x5ba   :  { %v860_v12 = vadd.f32 %v859_v10, %v773_v7  ;;  %v1708_v13 = vpop.f32.mrb[11].mxu1 }
 0x5bc   :  { %v863_v14 = vpack.c.bf16 %v860_v12, %v857_v11 }
 0x5be   :  { %1909 = vtanh.bf16 %v863_v14 }
 0x5c9   :  { %v1910_v15 = vpop.eup %1909 }
 0x5ca   :  { %v865_v16 = vmul.bf16 %v1910_v15, %v2346_v43 }
 0x5cc   :  { %1726 = vmatmul.mubr.bf16.vlgmr.msra.gmra.mrb[12].mxu0 %v865_v16  ;;  %v1166_v16 = vld [vmem:[#allocation10 + $0x12] ss:$0 sm:$0xff] }
 0x5cd   :  { %1737 = vmatprep.mubr.msk.bf16.mxu0 %vm2086_vm0, %v2085_v0  ;;  %1730 = vmatpush3.bf16.msra.mxu0 %v1883_v37  ;;  %v1896_v37 = vld [vmem:[#allocation9 + $0x8] sm:$0xff]  }
 0x5ce   :  { %1731 = vmatprep.subr.bf16.mxu0 %v2085_v0 }
 0x5d1   :  { %1732 = vmatpush3.bf16.msra.mxu0 %v1884_v38  ;;  %v1897_v38 = vld [vmem:[%s2485_s9] sm:$0xff]  }
 0x5d2   :  { %1733 = vmatprep.subr.bf16.mxu0 %v2085_v0 }
 0x5d5   :  { %1734 = vmatpush3.bf16.msra.mxu0 %v1885_v39  ;;  %v1898_v39 = vld [vmem:[%s2485_s9 + $0x8] sm:$0xff]  }
 0x5d6   :  { %1735 = vmatprep.subr.bf16.mxu0 %v2085_v0 }
 0x5d9   :  { %1736 = vmatpush3.bf16.msra.mxu0 %v1886_v40  ;;  %v1899_v40 = vld [vmem:[%s2485_s9 + $0x10] sm:$0xff]  }
 0x5da   :  { %1741 = vmatprep.subr.bf16.mxu0 %v2085_v0 }
 0x69f   :  { %v965_v18 = vpop.f32.mrb[12].mxu0 }
 0x6a0   :  { %v966_v19 = vadd.f32 %v965_v18, %v882_v17  ;;  %v1727_v20 = vpop.f32.mrb[13].mxu0 }
 0x6a1   :  { %v968_v21 = vpop.f32.mrb[14].mxu0 }
 0x6a2   :  { %v969_v23 = vadd.f32 %v968_v21, %v882_v17  ;;  %v1728_v24 = vpop.f32.mrb[15].mxu0  ;;  %v972_v25 = vsel %vm161_vm1, %v966_v19, -inf }
 0x6a3   :  { %973 = vmax.xlane.f32.xlu0 %v972_v25 }
 0x6a4   :  { %v975_v26 = vsel %vm161_vm1, %v969_v23, -inf }
 0x6a7   :  { %976 = vmax.xlane.f32.xlu0 %v975_v26 }
 0x730   :  { %v974_v27 = vpop.xlane.xlu0 %973 }
 0x731   :  { %v978_v28 = vsub.f32 %v966_v19, %v974_v27 }
 0x733   :  { %v980_v29 = vmul.f32 1.442695, %v978_v28 }
 0x734   :  { %v977_v30 = vpop.xlane.xlu0 %976 }
 0x735   :  { %1911 = vpow2.f32 %v980_v29  ;;  %v979_v31 = vsub.f32 %v969_v23, %v977_v30 }
 0x737   :  { %v982_v32 = vmul.f32 1.442695, %v979_v31 }
 0x739   :  { %1913 = vpow2.f32 %v982_v32 }
 0x73f   :  { %v1912_v33 = vpop.eup %1911 }
 0x740   :  { %v984_v34 = vsel %vm161_vm1, %v1912_v33, 0.0 }
 0x741   :  { %985 = vadd.xlane.f32.xlu1 %v984_v34 }
 0x743   :  { %v1914_v35 = vpop.eup %1913 }
 0x744   :  { %v987_v36 = vsel %vm161_vm1, %v1914_v35, 0.0 }
 0x745   :  { %988 = vadd.xlane.f32.xlu1 %v987_v36  ;;  %v1895_v36 = vld [vmem:[#allocation9] sm:$0xff]  }
 0x7ce   :  { %v986_v41 = vpop.xlane.xlu1 %985 }
 0x7cf   :  { %1915 = vrcp.f32 %v986_v41  ;;  %v1900_v41 = vld [vmem:[%s2485_s9 + $0x18] sm:$0xff]  }
 0x7d2   :  { %v989_v42 = vpop.xlane.xlu1 %988 }
 0x7d3   :  { %1917 = vrcp.f32 %v989_v42  ;;  %v1901_v42 = vld [vmem:[%s2485_s9 + $0x20] sm:$0xff]  }
 0x7d9   :  { %v1916_v43 = vpop.eup %1915 }
 0x7da   :  { %v992_v45 = vmul.f32 %v1916_v43, %v1912_v33  ;;  %v1902_v43 = vld [vmem:[%s2485_s9 + $0x28] sm:$0xff]  }
 0x7dd   :  { %v1918_v44 = vpop.eup %1917 }
 0x7de   :  { %v993_v46 = vmul.f32 %v1918_v44, %v1914_v35 }
 0x7e0   :  { %v994_v47 = vpack.c.bf16 %v993_v46, %v992_v45 }
 0x7e2   :  { %1738 = vmatmul.mubr.msk.bf16.vlgmr.msra.gmra.mrb[16].mxu0 %vm161_vm1, %v994_v47 }
 0x7e3   :  { %1749 = vmatprep.mubr.msk.bf16.mxu0 %vm2086_vm0, %v2085_v0  ;;  %1742 = vmatpush3.bf16.msra.mxu0 %v1887_v48 }
 0x7e4   :  { %1743 = vmatprep.subr.bf16.mxu0 %v2085_v0 }
 0x7e7   :  { %1744 = vmatpush3.bf16.msra.mxu0 %v1888_v49 }
 0x7e8   :  { %1745 = vmatprep.subr.bf16.mxu0 %v2085_v0 }
 0x7eb   :  { %1746 = vmatpush3.bf16.msra.mxu0 %v1889_v50 }
 0x7ec   :  { %1747 = vmatprep.subr.bf16.mxu0 %v2085_v0 }
 0x7ef   :  { %1748 = vmatpush3.bf16.msra.mxu0 %v1890_v51  ;;  %v1903_v51 = vld [vmem:[%s2485_s9 + $0x30] sm:$0xff]  }
 0x7f0   :  { %1765 = vmatprep.subr.bf16.mxu0 %v2085_v0 }
 0x8b5   :  { %v1067_v53 = vpop.f32.mrb[16].mxu0 }
 0x8b6   :  { %v1739_v55 = vpop.f32.mrb[17].mxu0  ;;  %v1068_v57 = vadd.f32 %v1067_v53, %v1005_v52  ;;  %v1263_v53 = vld [vmem:[#allocation10 + $0x14] ss:$0 sm:$0xff] }
 0x8b7   :  { %v1070_v56 = vpop.f32.mrb[18].mxu0 }
 0x8b8   :  { %v1071_v58 = vadd.f32 %v1070_v56, %v1005_v52  ;;  %v1740_v59 = vpop.f32.mrb[19].mxu0  ;;  %v1904_v52 = vld [vmem:[%s2485_s9 + $0x38] sm:$0xff]  }
 0x8ba   :  { %v1074_v60 = vpack.c.bf16 %v1071_v58, %v1068_v57 }
 0x8bc   :  { %1919 = vtanh.bf16 %v1074_v60 }
 0x8c7   :  { %v1920_v63 = vpop.eup %1919 }
 0x8c8   :  { %v1076_v1 = vmul.bf16 %v1920_v63, %v996_v62  ;;  %v1338_v63 = vld [vmem:[#allocation10 + $0x15] ss:$0 sm:$0xff] }
 0x8ca   :  { %1750 = vmatmul.mubr.msk.bf16.vlgmr.msra.gmra.mrb[20].mxu0 %vm161_vm1, %v1076_v1 }
 0x8cb   :  { %1769 = vmatprep.mubr.msk.bf16.mxu0 %vm2086_vm0, %v2085_v0  ;;  %1766 = vmatpush3.bf16.msra.mxu0 %v1895_v36 }
 0x8cc   :  { %1767 = vmatprep.subr.bf16.mxu0 %v2085_v0 }
 0x8cf   :  { %1768 = vmatpush3.bf16.msra.mxu0 %v1896_v37 }
 0x99d   :  { %v1148_v7 = vpop.f32.mrb[20].mxu0 }
 0x99e   :  { %v1751_v8 = vpop.f32.mrb[21].mxu0  ;;  %v1149_v10 = vadd.f32 %v1148_v7, %v1086_v6 }
 0x99f   :  { %v1151_v9 = vpop.f32.mrb[22].mxu0  ;;  %v1437_v8 = vand.u32 127, %v227_v54 }
 0x9a0   :  { %v1152_v11 = vadd.f32 %v1151_v9, %v1086_v6  ;;  %v1752_v12 = vpop.f32.mrb[23].mxu0 }
 0x9a1   :  { %vm1438_vm3 = vcmp.eq.s32.totalorder %v1437_v8, 10 }
 0x9a2   :  { %v1155_v13 = vpack.c.bf16 %v1152_v11, %v1149_v10 }
 0x9a4   :  { %1921 = vtanh.bf16 %v1155_v13 }
 0x9af   :  { %v1922_v14 = vpop.eup %1921 }
 0x9b0   :  { %v1157_v15 = vmul.bf16 %v1922_v14, %v996_v62 }
 0x9b2   :  { %1762 = vmatmul.mubr.msk.bf16.vlgmr.msra.gmra.mrb[12].mxu1 %vm161_vm1, %v1157_v15 }
 0x9b3   :  { %1789 = vmatprep.mubr.msk.bf16.mxu1 %vm2086_vm0, %v2085_v0  ;;  %1774 = vmatpush3.bf16.msra.mxu1 %v1897_v38 }
 0x9b4   :  { %1775 = vmatprep.subr.bf16.mxu1 %v2085_v0 }
 0x9b7   :  { %1776 = vmatpush3.bf16.msra.mxu1 %v1898_v39 }
 0x9b8   :  { %1777 = vmatprep.subr.bf16.mxu1 %v2085_v0 }
 0x9bb   :  { %1778 = vmatpush3.bf16.msra.mxu1 %v1899_v40 }
 0x9bc   :  { %1779 = vmatprep.subr.bf16.mxu1 %v2085_v0 }
 0x9bf   :  { %1780 = vmatpush3.bf16.msra.mxu1 %v1900_v41 }
 0x9c0   :  { %1781 = vmatprep.subr.bf16.mxu1 %v2085_v0 }
 0x9c3   :  { %1782 = vmatpush3.bf16.msra.mxu1 %v1901_v42 }
 0x9c4   :  { %1783 = vmatprep.subr.bf16.mxu1 %v2085_v0 }
 0x9c7   :  { %1784 = vmatpush3.bf16.msra.mxu1 %v1902_v43 }
 0x9c8   :  { %1785 = vmatprep.subr.bf16.mxu1 %v2085_v0 }
 0x9cb   :  { %1786 = vmatpush3.bf16.msra.mxu1 %v1903_v51 }
 0x9cc   :  { %1787 = vmatprep.subr.bf16.mxu1 %v2085_v0 }
 0x9cf   :  { %1788 = vmatpush3.bf16.msra.mxu1 %v1904_v52 }
 0xa85   :  { %v1228_v17 = vpop.f32.mrb[12].mxu1 }
 0xa86   :  { %v1229_v18 = vadd.f32 %v1228_v17, %v1166_v16  ;;  %v1763_v19 = vpop.f32.mrb[13].mxu1 }
 0xa87   :  { %v1231_v20 = vpop.f32.mrb[14].mxu1 }
 0xa88   :  { %v1232_v21 = vadd.f32 %v1231_v20, %v1166_v16  ;;  %v1764_v23 = vpop.f32.mrb[15].mxu1  ;;  %v1236_v24 = vsel %vm1235_vm2, %v1229_v18, -inf }
 0xa89   :  { %1237 = vmax.xlane.f32.xlu0 %v1236_v24 }
 0xa8a   :  { %v1239_v25 = vsel %vm1235_vm2, %v1232_v21, -inf }
 0xa8b   :  { %1240 = vmax.xlane.f32.xlu1 %v1239_v25 }
 0xb16   :  { %v1238_v26 = vpop.xlane.xlu0 %1237 }
 0xb17   :  { %v1242_v27 = vsub.f32 %v1229_v18, %v1238_v26 }
 0xb18   :  { %v1241_v28 = vpop.xlane.xlu1 %1240 }
 0xb19   :  { %v1244_v29 = vmul.f32 1.442695, %v1242_v27  ;;  %v1243_v30 = vsub.f32 %v1232_v21, %v1241_v28 }
 0xb1b   :  { %1923 = vpow2.f32 %v1244_v29  ;;  %v1246_v31 = vmul.f32 1.442695, %v1243_v30 }
 0xb1d   :  { %1925 = vpow2.f32 %v1246_v31 }
 0xb25   :  { %v1924_v32 = vpop.eup %1923 }
 0xb26   :  { %v1248_v33 = vsel %vm1235_vm2, %v1924_v32, 0.0 }
 0xb27   :  { %v1926_v34 = vpop.eup %1925  ;;  %1249 = vadd.xlane.f32.xlu0 %v1248_v33 }
 0xb28   :  { %v1251_v35 = vsel %vm1235_vm2, %v1926_v34, 0.0 }
 0xb29   :  { %1252 = vadd.xlane.f32.xlu1 %v1251_v35 }
 0xbb4   :  { %v1250_v44 = vpop.xlane.xlu0 %1249 }
 0xbb5   :  { %1927 = vrcp.f32 %v1250_v44 }
 0xbb6   :  { %v1253_v45 = vpop.xlane.xlu1 %1252 }
 0xbb7   :  { %1929 = vrcp.f32 %v1253_v45 }
 0xbbf   :  { %v1928_v46 = vpop.eup %1927 }
 0xbc0   :  { %v1256_v48 = vmul.f32 %v1928_v46, %v1924_v32 }
 0xbc1   :  { %v1930_v47 = vpop.eup %1929 }
 0xbc2   :  { %v1257_v49 = vmul.f32 %v1930_v47, %v1926_v34 }
 0xbc4   :  { %v1258_v50 = vpack.c.bf16 %v1257_v49, %v1256_v48 }
 0xbc6   :  { %1770 = vmatmul.mubr.msk.bf16.vlgmr.msra.gmra.mrb[24].mxu0 %vm1235_vm2, %v1258_v50 }
 0xc99   :  { %v1313_v55 = vpop.f32.mrb[24].mxu0 }
 0xc9a   :  { %v1771_v56 = vpop.f32.mrb[25].mxu0  ;;  %v1314_v58 = vadd.f32 %v1313_v55, %v1263_v53 }
 0xc9b   :  { %v1316_v57 = vpop.f32.mrb[26].mxu0 }
 0xc9c   :  { %v1317_v59 = vadd.f32 %v1316_v57, %v1263_v53  ;;  %v1772_v60 = vpop.f32.mrb[27].mxu0 }
 0xc9e   :  { %v1320_v61 = vpack.c.bf16 %v1317_v59, %v1314_v58 }
 0xca0   :  { %v1321_v62 = vmax.bf16 %v2087_v22, %v1320_v61 }
 0xca2   :  { %1790 = vmatmul.mubr.bf16.vlgmr.msra.gmra.mrb[16].mxu1 %v1321_v62 }
 0xd75   :  { %v1421_v1 = vpop.f32.mrb[16].mxu1 }
 0xd76   :  { %v1422_v2 = vadd.f32 %v1421_v1, %v1338_v63  ;;  %v1791_v0 = vpop.f32.mrb[17].mxu1 }
 0xd77   :  { %v1424_v3 = vpop.f32.mrb[18].mxu1 }
 0xd78   :  { %v1428_v4 = vmul.f32 0.5, %v1422_v2  ;;  %v1425_v5 = vadd.f32 %v1424_v3, %v1338_v63  ;;  %v1792_v6 = vpop.f32.mrb[19].mxu1 }
 0xd7a   :  { %1931 = vtanh.f32 %v1428_v4  ;;  %v1429_v7 = vmul.f32 0.5, %v1425_v5 }
 0xd7c   :  { %1933 = vtanh.f32 %v1429_v7 }
 0xd84   :  { %v1932_v9 = vpop.eup %1931 }
 0xd85   :  { %v1432_v10 = vadd.f32 1.0, %v1932_v9 }
 0xd86   :  { %v1934_v11 = vpop.eup %1933 }
 0xd87   :  { %v1434_v12 = vmul.f32 0.5, %v1432_v10  ;;  %v1433_v22 = vadd.f32 1.0, %v1934_v11 }
 0xd89   :  { %v1439_v13 = vsel %vm1438_vm3, %v1434_v12, %v1422_v2  ;;  %v1435_v14 = vmul.f32 0.5, %v1433_v22 }
 0xd8a   :  { %1441 = vst [vmem:[%s2487_s11] sm:$0xff] %v1439_v13 }
 0xd8b   :  { %v1440_v15 = vsel %vm1438_vm3, %v1435_v14, %v1425_v5 }
 0xd8c   :  { %1442 = vst [vmem:[%s2487_s11 + $0x8] sm:$0xff] %v1440_v15 }
 0xd8d   :  { %1447 = vsyncpa [#allocation3], 1 }
 0xd8e   :  { %1448 = vsyncpa [#allocation5], 1 }
 0xd8f   :  { %1449 = vsyncpa [#allocation8], 1 }
 0xd90   :  { %1450 = vsyncpa [#allocation11], 1 }

</bundles_post_ra>
